<compile_context>
chip_gen: v7x
topology: tpu7x:2x2x1
jax: 0.10.0
libtpu: 0.0.40
codegen_flags: <defaults>
</compile_context>

<pallas_src>
import functools

import jax
import jax.numpy as jnp
from jax.experimental import pallas as pl
from jax.experimental.pallas import tpu as pltpu

NUM = 50
H1, H2, H3 = 100, 150, 100
# Lane-dense (multiple-of-128) padded feature dims.
NP, H1P, H2P, H3P = 128, 128, 256, 128

_LOGICAL_DIMS = [(NUM, H1), (H1, H2), (H2, H3), (H3, NUM)]
_PADDED_DIMS = [(NP, H1P), (H1P, H2P), (H2P, H3P), (H3P, NP)]


def _mlp_kernel(x_ref,
                w1_ref, b1_ref,
                w2_ref, b2_ref,
                w3_ref, b3_ref,
                w4_ref, b4_ref,
                o_ref,
                xpad_ref):
    # In-kernel pad: put the 50 real features into the first lanes of a
    # lane-dense (tile, 128) bf16 scratch. Re-zeroed every grid step so it is
    # correct under megacore ("parallel") sharding (each core has its own
    # scratch and may not see step 0).
    xpad_ref[...] = jnp.zeros_like(xpad_ref)
    xpad_ref[:, :NUM] = x_ref[...].astype(jnp.bfloat16)

    def layer(h_bf16, w_ref, b_ref):
        # bf16 MXU matmul with f32 accumulation, f32 bias add, f32 tanh
        # (EUP is not the bottleneck; f32 tanh is free and more accurate).
        acc = jnp.dot(h_bf16, w_ref[...],
                      preferred_element_type=jnp.float32) + b_ref[...]
        return jnp.tanh(acc)

    h = layer(xpad_ref[...], w1_ref, b1_ref).astype(jnp.bfloat16)
    h = layer(h, w2_ref, b2_ref).astype(jnp.bfloat16)
    h = layer(h, w3_ref, b3_ref).astype(jnp.bfloat16)
    h = layer(h, w4_ref, b4_ref)
    # bf16 output store: halves the largest HBM stream; lane-dense (128) width.
    o_ref[...] = h.astype(o_ref.dtype)


def _round_up(n, m):
    return ((n + m - 1) // m) * m


@functools.partial(jax.jit, static_argnames=("tb",))
def net_forward(x, params, tb=2048):
    """x: [B, NUM] float32. params: prepared padded params (bf16 W, f32 b)."""
    B = x.shape[0]
    # Batch tile: as large as possible (per-grid-step overhead ~0.35 us), but
    # keep >= 2 grid steps when B allows so the "parallel" batch axis can be
    # split across both TensorCores on v7x. Minimum 8 sublanes.
    tile = _round_up(max(8, min(tb, _round_up((B + 1) // 2, 8))), 8)
    grid = ((B + tile - 1) // tile,)

    ws = [params[f"w{i}"] for i in range(1, 5)]   # bf16, zero-padded
    bs = [params[f"b{i}"] for i in range(1, 5)]   # f32, (1, padded)

    def resident(shape):
        # Constant block index => stays VMEM-resident, not re-DMA'd per step.
        return pl.BlockSpec(shape, lambda i: (0, 0))

    # x streamed unpadded: last block dim 50 equals the full array dim (legal).
    in_specs = [pl.BlockSpec((tile, NUM), lambda i: (i, 0))]
    for w, b in zip(ws, bs):
        in_specs.append(resident(w.shape))
        in_specs.append(resident(b.shape))

    out_p = pl.pallas_call(
        _mlp_kernel,
        out_shape=jax.ShapeDtypeStruct((B, NP), jnp.bfloat16),
        grid=grid,
        in_specs=in_specs,
        out_specs=pl.BlockSpec((tile, NP), lambda i: (i, 0)),
        scratch_shapes=[pltpu.VMEM((tile, NP), jnp.bfloat16)],
        compiler_params=pltpu.CompilerParams(
            dimension_semantics=("parallel",),
            vmem_limit_bytes=32 * 1024 * 1024),
    )(x, ws[0], bs[0], ws[1], bs[1], ws[2], bs[2], ws[3], bs[3])

    # Slice off lane padding; tiny cast back to f32 for PyTorch API parity.
    return out_p[:B, :NUM].astype(jnp.float32)


def init_params(key):
    """PyTorch-style uniform(+-1/sqrt(fan_in)) init, zero-padded, in float32."""
    params = {}
    for i, ((fi, fo), (pfi, pfo)) in enumerate(
            zip(_LOGICAL_DIMS, _PADDED_DIMS), start=1):
        key, kw, kb = jax.random.split(key, 3)
        bound = 1.0 / jnp.sqrt(jnp.float32(fi))
        w = jax.random.uniform(kw, (fi, fo), jnp.float32,
                               minval=-bound, maxval=bound)
        b = jax.random.uniform(kb, (1, fo), jnp.float32,
                               minval=-bound, maxval=bound)
        # Padded entries MUST be exactly zero so tanh(0)=0 keeps padded lanes inert.
        params[f"w{i}"] = jnp.zeros((pfi, pfo), jnp.float32).at[:fi, :fo].set(w)
        params[f"b{i}"] = jnp.zeros((1, pfo), jnp.float32).at[:, :fo].set(b)
    return params


def prepare_params(params_f32):
    """One-time conversion to kernel dtypes: bf16 weights (MXU-native), f32 biases."""
    prepared = {}
    for i in range(1, 5):
        prepared[f"w{i}"] = params_f32[f"w{i}"].astype(jnp.bfloat16)
        prepared[f"b{i}"] = params_f32[f"b{i}"]
    return prepared


def reference_forward(x, params_f32):
    """Pure-f32 JAX reference on the logical (unpadded) weights."""
    h = x
    for i, (fi, fo) in enumerate(_LOGICAL_DIMS, start=1):
        w = params_f32[f"w{i}"][:fi, :fo]
        b = params_f32[f"b{i}"][:, :fo]
        h = jnp.tanh(h @ w + b)
    return h


if __name__ == "__main__":
    key = jax.random.PRNGKey(0)
    key, kx = jax.random.split(key)
    B = 8
    x = jax.random.normal(kx, (B, NUM), jnp.float32)

    params_f32 = init_params(key)
    # Convert weights to bf16 exactly once (not per forward call).
    params = jax.block_until_ready(prepare_params(params_f32))

    out = net_forward(x, params)
    out = jax.block_until_ready(out)

    ref = reference_forward(x, params_f32)
    assert out.shape == (B, NUM)
    # bf16 matmul inputs / bf16 output store (f32 accumulation, f32 tanh)
    # vs. pure-f32 reference: loose absolute tolerance.
    assert jnp.allclose(out, ref, atol=5e-2, rtol=0.0), (
        float(jnp.max(jnp.abs(out - ref))))
    print("KERNEL_OK")
</pallas_src>

<mosaic_0001>
module attributes {stable_mosaic.version = 11 : i64} {
  func.func @_mlp_kernel(%arg0: i32, %arg1: memref<8x50xf32, #tpu.memory_space<vmem>>, %arg2: memref<128x128xbf16, #tpu.memory_space<vmem>>, %arg3: memref<1x128xf32, #tpu.memory_space<vmem>>, %arg4: memref<128x256xbf16, #tpu.memory_space<vmem>>, %arg5: memref<1x256xf32, #tpu.memory_space<vmem>>, %arg6: memref<256x128xbf16, #tpu.memory_space<vmem>>, %arg7: memref<1x128xf32, #tpu.memory_space<vmem>>, %arg8: memref<128x128xbf16, #tpu.memory_space<vmem>>, %arg9: memref<1x128xf32, #tpu.memory_space<vmem>>, %arg10: memref<8x128xbf16, #tpu.memory_space<vmem>>, %arg11: memref<8x128xbf16, #tpu.memory_space<vmem>>) attributes {dimension_semantics = [#tpu.dimension_semantics<parallel>], iteration_bounds = array<i64: 1>, scalar_prefetch = 0 : i64, scratch_operands = 1 : i64, tpu.core_type = #tpu.core_type<tc>, window_params = [{transform_indices = @transform_0, window_bounds = array<i64: 8, 50>}, {pipeline_mode = #tpu.pipeline_mode<synchronous>, transform_indices = @transform_1, window_bounds = array<i64: 128, 128>}, {pipeline_mode = #tpu.pipeline_mode<synchronous>, transform_indices = @transform_2, window_bounds = array<i64: 1, 128>}, {pipeline_mode = #tpu.pipeline_mode<synchronous>, transform_indices = @transform_3, window_bounds = array<i64: 128, 256>}, {pipeline_mode = #tpu.pipeline_mode<synchronous>, transform_indices = @transform_4, window_bounds = array<i64: 1, 256>}, {pipeline_mode = #tpu.pipeline_mode<synchronous>, transform_indices = @transform_5, window_bounds = array<i64: 256, 128>}, {pipeline_mode = #tpu.pipeline_mode<synchronous>, transform_indices = @transform_6, window_bounds = array<i64: 1, 128>}, {pipeline_mode = #tpu.pipeline_mode<synchronous>, transform_indices = @transform_7, window_bounds = array<i64: 128, 128>}, {pipeline_mode = #tpu.pipeline_mode<synchronous>, transform_indices = @transform_8, window_bounds = array<i64: 1, 128>}, {transform_indices = @transform_9, window_bounds = array<i64: 8, 128>}]} {
    %cst = arith.constant 0.000000e+00 : bf16
    %0 = vector.broadcast %cst : bf16 to vector<8x128xbf16>
    %c0 = arith.constant 0 : index
    %c0_0 = arith.constant 0 : index
    %1 = vector.load %arg11[%c0, %c0_0] : memref<8x128xbf16, #tpu.memory_space<vmem>>, vector<8x128xbf16>
    tpu.vector_store %arg11[%c0, %c0_0], %0 {strides = array<i32>} : memref<8x128xbf16, #tpu.memory_space<vmem>>, vector<8x128xbf16>,
    %c0_1 = arith.constant 0 : index
    %c0_2 = arith.constant 0 : index
    %2 = vector.load %arg1[%c0_1, %c0_2] : memref<8x50xf32, #tpu.memory_space<vmem>>, vector<8x50xf32>
    %3 = arith.truncf %2 : vector<8x50xf32> to vector<8x50xbf16>
    %c0_3 = arith.constant 0 : index
    %c0_4 = arith.constant 0 : index
    %4 = vector.load %arg11[%c0_3, %c0_4] : memref<8x128xbf16, #tpu.memory_space<vmem>>, vector<8x50xbf16>
    tpu.vector_store %arg11[%c0_3, %c0_4], %3 {strides = array<i32>} : memref<8x128xbf16, #tpu.memory_space<vmem>>, vector<8x50xbf16>,
    %c0_5 = arith.constant 0 : index
    %c0_6 = arith.constant 0 : index
    %5 = vector.load %arg11[%c0_5, %c0_6] : memref<8x128xbf16, #tpu.memory_space<vmem>>, vector<8x128xbf16>
    %c0_7 = arith.constant 0 : index
    %c0_8 = arith.constant 0 : index
    %6 = vector.load %arg2[%c0_7, %c0_8] : memref<128x128xbf16, #tpu.memory_space<vmem>>, vector<128x128xbf16>
    %cst_9 = arith.constant dense<0.000000e+00> : vector<8x128xf32>
    %7 = tpu.matmul %5, %6, %cst_9 {dimension_numbers = #tpu.dot_dimension_numbers<[1], [0], [0], [1], [0, 0, 1, 1], [], []>} : vector<8x128xbf16>, vector<128x128xbf16>, vector<8x128xf32> -> vector<8x128xf32>
    %c0_10 = arith.constant 0 : index
    %c0_11 = arith.constant 0 : index
    %8 = vector.load %arg3[%c0_10, %c0_11] : memref<1x128xf32, #tpu.memory_space<vmem>>, vector<1x128xf32>
    %9 = vector.broadcast %8 : vector<1x128xf32> to vector<8x128xf32>
    %10 = arith.addf %7, %9 : vector<8x128xf32>
    %11 = math.tanh %10 : vector<8x128xf32>
    %12 = arith.truncf %11 : vector<8x128xf32> to vector<8x128xbf16>
    %c0_12 = arith.constant 0 : index
    %c0_13 = arith.constant 0 : index
    %13 = vector.load %arg4[%c0_12, %c0_13] : memref<128x256xbf16, #tpu.memory_space<vmem>>, vector<128x256xbf16>
    %cst_14 = arith.constant dense<0.000000e+00> : vector<8x256xf32>
    %14 = tpu.matmul %12, %13, %cst_14 {dimension_numbers = #tpu.dot_dimension_numbers<[1], [0], [0], [1], [0, 0, 1, 1], [], []>} : vector<8x128xbf16>, vector<128x256xbf16>, vector<8x256xf32> -> vector<8x256xf32>
    %c0_15 = arith.constant 0 : index
    %c0_16 = arith.constant 0 : index
    %15 = vector.load %arg5[%c0_15, %c0_16] : memref<1x256xf32, #tpu.memory_space<vmem>>, vector<1x256xf32>
    %16 = vector.broadcast %15 : vector<1x256xf32> to vector<8x256xf32>
    %17 = arith.addf %14, %16 : vector<8x256xf32>
    %18 = math.tanh %17 : vector<8x256xf32>
    %19 = arith.truncf %18 : vector<8x256xf32> to vector<8x256xbf16>
    %c0_17 = arith.constant 0 : index
    %c0_18 = arith.constant 0 : index
    %20 = vector.load %arg6[%c0_17, %c0_18] : memref<256x128xbf16, #tpu.memory_space<vmem>>, vector<256x128xbf16>
    %cst_19 = arith.constant dense<0.000000e+00> : vector<8x128xf32>
    %21 = tpu.matmul %19, %20, %cst_19 {dimension_numbers = #tpu.dot_dimension_numbers<[1], [0], [0], [1], [0, 0, 1, 1], [], []>} : vector<8x256xbf16>, vector<256x128xbf16>, vector<8x128xf32> -> vector<8x128xf32>
    %c0_20 = arith.constant 0 : index
    %c0_21 = arith.constant 0 : index
    %22 = vector.load %arg7[%c0_20, %c0_21] : memref<1x128xf32, #tpu.memory_space<vmem>>, vector<1x128xf32>
    %23 = vector.broadcast %22 : vector<1x128xf32> to vector<8x128xf32>
    %24 = arith.addf %21, %23 : vector<8x128xf32>
    %25 = math.tanh %24 : vector<8x128xf32>
    %26 = arith.truncf %25 : vector<8x128xf32> to vector<8x128xbf16>
    %c0_22 = arith.constant 0 : index
    %c0_23 = arith.constant 0 : index
    %27 = vector.load %arg8[%c0_22, %c0_23] : memref<128x128xbf16, #tpu.memory_space<vmem>>, vector<128x128xbf16>
    %cst_24 = arith.constant dense<0.000000e+00> : vector<8x128xf32>
    %28 = tpu.matmul %26, %27, %cst_24 {dimension_numbers = #tpu.dot_dimension_numbers<[1], [0], [0], [1], [0, 0, 1, 1], [], []>} : vector<8x128xbf16>, vector<128x128xbf16>, vector<8x128xf32> -> vector<8x128xf32>
    %c0_25 = arith.constant 0 : index
    %c0_26 = arith.constant 0 : index
    %29 = vector.load %arg9[%c0_25, %c0_26] : memref<1x128xf32, #tpu.memory_space<vmem>>, vector<1x128xf32>
    %30 = vector.broadcast %29 : vector<1x128xf32> to vector<8x128xf32>
    %31 = arith.addf %28, %30 : vector<8x128xf32>
    %32 = math.tanh %31 : vector<8x128xf32>
    %33 = arith.truncf %32 : vector<8x128xf32> to vector<8x128xbf16>
    %c0_27 = arith.constant 0 : index
    %c0_28 = arith.constant 0 : index
    %34 = vector.load %arg10[%c0_27, %c0_28] : memref<8x128xbf16, #tpu.memory_space<vmem>>, vector<8x128xbf16>
    tpu.vector_store %arg10[%c0_27, %c0_28], %33 {strides = array<i32>} : memref<8x128xbf16, #tpu.memory_space<vmem>>, vector<8x128xbf16>,
    return
  }
  func.func @transform_0(%arg0: i32) -> (i32, i32) {
    %c0_i32 = arith.constant 0 : i32
    %c0_i32_0 = arith.constant 0 : i32
    return %arg0, %c0_i32 : i32, i32
  }
  func.func @transform_1(%arg0: i32) -> (i32, i32) {
    %c0_i32 = arith.constant 0 : i32
    %c0_i32_0 = arith.constant 0 : i32
    %c0_i32_1 = arith.constant 0 : i32
    return %c0_i32, %c0_i32_0 : i32, i32
  }
  func.func @transform_2(%arg0: i32) -> (i32, i32) {
    %c0_i32 = arith.constant 0 : i32
    %c0_i32_0 = arith.constant 0 : i32
    %c0_i32_1 = arith.constant 0 : i32
    return %c0_i32, %c0_i32_0 : i32, i32
  }
  func.func @transform_3(%arg0: i32) -> (i32, i32) {
    %c0_i32 = arith.constant 0 : i32
    %c0_i32_0 = arith.constant 0 : i32
    %c0_i32_1 = arith.constant 0 : i32
    return %c0_i32, %c0_i32_0 : i32, i32
  }
  func.func @transform_4(%arg0: i32) -> (i32, i32) {
    %c0_i32 = arith.constant 0 : i32
    %c0_i32_0 = arith.constant 0 : i32
    %c0_i32_1 = arith.constant 0 : i32
    return %c0_i32, %c0_i32_0 : i32, i32
  }
  func.func @transform_5(%arg0: i32) -> (i32, i32) {
    %c0_i32 = arith.constant 0 : i32
    %c0_i32_0 = arith.constant 0 : i32
    %c0_i32_1 = arith.constant 0 : i32
    return %c0_i32, %c0_i32_0 : i32, i32
  }
  func.func @transform_6(%arg0: i32) -> (i32, i32) {
    %c0_i32 = arith.constant 0 : i32
    %c0_i32_0 = arith.constant 0 : i32
    %c0_i32_1 = arith.constant 0 : i32
    return %c0_i32, %c0_i32_0 : i32, i32
  }
  func.func @transform_7(%arg0: i32) -> (i32, i32) {
    %c0_i32 = arith.constant 0 : i32
    %c0_i32_0 = arith.constant 0 : i32
    %c0_i32_1 = arith.constant 0 : i32
    return %c0_i32, %c0_i32_0 : i32, i32
  }
  func.func @transform_8(%arg0: i32) -> (i32, i32) {
    %c0_i32 = arith.constant 0 : i32
    %c0_i32_0 = arith.constant 0 : i32
    %c0_i32_1 = arith.constant 0 : i32
    return %c0_i32, %c0_i32_0 : i32, i32
  }
  func.func @transform_9(%arg0: i32) -> (i32, i32) {
    %c0_i32 = arith.constant 0 : i32
    %c0_i32_0 = arith.constant 0 : i32
    return %arg0, %c0_i32 : i32, i32
  }
}

</mosaic_0001>

<bundles_post_ra>
// kernel: net_forward.1
= control target key start
LH: loop header
LB: loop body
LE: loop exit
PB: predicated region body
PF: predicated region fallthrough
CT: control target
= control target key end

     0   :  { %14 = vsyncpa [#allocation4], 0  ;;  %s1160_s0 = inlined_call_operand.hbm [shape: f32[8,50], index: 0, kind: input, shape index: {}]   ;;  %s1161_s1 = inlined_call_operand.hbm [shape: bf16[128,128], index: 1, kind: input, shape index: {}]   ;;  %s1162_s2 = inlined_call_operand.vmem [shape: f32[1,128], index: 2, kind: input, shape index: {}]   ;;  %s1163_s3 = inlined_call_operand.hbm [shape: bf16[128,256], index: 3, kind: input, shape index: {}]   ;;  %s1164_s4 = inlined_call_operand.vmem [shape: f32[1,256], index: 4, kind: input, shape index: {}]   ;;  %s1165_s5 = inlined_call_operand.hbm [shape: bf16[256,128], index: 5, kind: input, shape index: {}]   ;;  %s1166_s6 = inlined_call_operand.vmem [shape: f32[1,128], index: 6, kind: input, shape index: {}]   ;;  %s1167_s7 = inlined_call_operand.hbm [shape: bf16[128,128], index: 7, kind: input, shape index: {}]   ;;  %s1168_s8 = inlined_call_operand.vmem [shape: f32[1,128], index: 8, kind: input, shape index: {}]   ;;  %s1169_s9 = inlined_call_operand.vmem [shape: bf16[8,128], index: 9, kind: output, shape index: {}]  }
   0x1   :  { %15 = vsyncpa [#allocation6], 0 }
   0x2   :  { %16 = vsyncpa [#allocation9], 0  ;;  %s994_s30 = smov [#allocation5]   ;;  %s878_s13 = scalar_lea.hbm %s1161_s1, 1024 }
   0x3   :  { %s32_s10 = sshll.u32 %s994_s30, 4  ;;  %p879_p0 = scmp.ne.s32.totalorder %s1161_s1, %s878_s13  ;;  %s33_s10 = int_to_ptr.vmem [resolvable:$true] %s32_s10 }
   0x4   :  { %p882_p1 = scmp.lt.u32.totalorder %s878_s13, %s1161_s1 }
   0x6   :  { %p884_p2 = pnand %p882_p1, %p879_p0 }
   0x8   :  { %887 = shalt.err (!%p884_p2)
}
   0x9   :  { %s888_s18 = scalar_lea.vmem %s33_s10, 1024  ;;  %p893_p4 = scmp.lt.s32.totalorder %s33_s10, %s33_s10 }
   0xa   :  { %p889_p3 = scmp.ne.s32.totalorder %s33_s10, %s888_s18  ;;  %p894_p5 = scmp.lt.s32.totalorder %s888_s18, %s888_s18 }
   0xc   :  { %p895_p6 = por %p894_p5, %p893_p4 }
   0xe   :  { %p896_p7 = pnand %p895_p6, %p889_p3 }
  0x10   :  { %899 = shalt.err (!%p896_p7)
}
  0x11   :  { %s995_s19 = smov 64   ;;  %s996_s20 = smov 4  }
  0x12   :  { %38 = dma.hbm_to_vmem [thread:$0]  %s1161_s1, 1024, %s33_s10, [#allocation6], %s995_s19, %s995_s19, %s996_s20  }
  0x13   :  { %s997_s23 = smov [#allocation8]   ;;  %s998_s25 = smov [#allocation3]  }
  0x14   :  { %s60_s24 = sshll.u32 %s997_s23, 4  ;;  %s23_s26 = sshll.u32 %s998_s25, 4  ;;  %s61_s24 = int_to_ptr.vmem [resolvable:$true] %s60_s24  ;;  %s24_s26 = int_to_ptr.vmem [resolvable:$true] %s23_s26 }
  0x15   :  { %s900_s29 = scalar_lea.hbm %s1165_s5, 2048 }
  0x16   :  { %p901_p8 = scmp.ne.s32.totalorder %s1165_s5, %s900_s29  ;;  %p904_p9 = scmp.lt.u32.totalorder %s900_s29, %s1165_s5 }
  0x18   :  { %p906_p10 = pnand %p904_p9, %p901_p8 }
  0x1a   :  { %909 = shalt.err (!%p906_p10)
}
  0x1b   :  { %s910_s1 = scalar_lea.vmem %s61_s24, 2048  ;;  %p915_p12 = scmp.lt.s32.totalorder %s61_s24, %s61_s24 }
  0x1c   :  { %p911_p11 = scmp.ne.s32.totalorder %s61_s24, %s910_s1  ;;  %p916_p13 = scmp.lt.s32.totalorder %s910_s1, %s910_s1 }
  0x1e   :  { %p917_p0 = por %p916_p13, %p915_p12 }
  0x20   :  { %p918_p1 = pnand %p917_p0, %p911_p11 }
  0x22   :  { %921 = shalt.err (!%p918_p1)
}
  0x23   :  { %66 = dma.hbm_to_vmem [thread:$0]  %s1165_s5, 2048, %s61_s24, [#allocation9], %s995_s19, %s995_s19, %s996_s20  }
  0x24   :  { %s922_s17 = scalar_lea.hbm %s1160_s0, 128 }
  0x25   :  { %p923_p2 = scmp.ne.s32.totalorder %s1160_s0, %s922_s17  ;;  %p926_p3 = scmp.lt.u32.totalorder %s922_s17, %s1160_s0 }
  0x27   :  { %p928_p4 = pnand %p926_p3, %p923_p2 }
  0x29   :  { %931 = shalt.err (!%p928_p4)
}
  0x2a   :  { %s932_s25 = scalar_lea.vmem %s24_s26, 128  ;;  %p937_p6 = scmp.lt.s32.totalorder %s24_s26, %s24_s26 }
  0x2b   :  { %p933_p5 = scmp.ne.s32.totalorder %s24_s26, %s932_s25  ;;  %p938_p7 = scmp.lt.s32.totalorder %s932_s25, %s932_s25 }
  0x2d   :  { %p939_p8 = por %p938_p7, %p937_p6 }
  0x2f   :  { %p940_p9 = pnand %p939_p8, %p933_p5 }
  0x31   :  { %943 = shalt.err (!%p940_p9)
}
  0x32   :  { %26 = dma.hbm_to_vmem [thread:$0]  %s1160_s0, 128, %s24_s26, [#allocation4]  }
  0x33   :  { %s999_s27 = smov [#allocation7]   ;;  %s944_s11 = scalar_lea.hbm %s1163_s3, 2048 }
  0x34   :  { %s46_s28 = sshll.u32 %s999_s27, 4  ;;  %p945_p10 = scmp.ne.s32.totalorder %s1163_s3, %s944_s11  ;;  %s47_s28 = int_to_ptr.vmem [resolvable:$true] %s46_s28 }
  0x35   :  { %p948_p11 = scmp.lt.u32.totalorder %s944_s11, %s1163_s3 }
  0x37   :  { %p950_p12 = pnand %p948_p11, %p945_p10 }
  0x39   :  { %953 = shalt.err (!%p950_p12)
}
  0x3a   :  { %s954_s14 = scalar_lea.vmem %s47_s28, 2048  ;;  %p959_p0 = scmp.lt.s32.totalorder %s47_s28, %s47_s28 }
  0x3b   :  { %p955_p13 = scmp.ne.s32.totalorder %s47_s28, %s954_s14  ;;  %p960_p1 = scmp.lt.s32.totalorder %s954_s14, %s954_s14 }
  0x3d   :  { %p961_p2 = por %p960_p1, %p959_p0 }
  0x3f   :  { %p962_p3 = pnand %p961_p2, %p955_p13 }
  0x41   :  { %965 = shalt.err (!%p962_p3)
}
  0x42   :  { %s1000_s0 = smov 128   ;;  %s1001_s26 = smov 8  }
  0x43   :  { %52 = dma.hbm_to_vmem [thread:$0]  %s1163_s3, 2048, %s47_s28, [#allocation6], %s1000_s0, %s1000_s0, %s1001_s26  }
  0x44   :  { %s1002_s17 = smov [#allocation10]   ;;  %s966_s23 = scalar_lea.hbm %s1167_s7, 1024 }
  0x45   :  { %s74_s18 = sshll.u32 %s1002_s17, 4  ;;  %p967_p4 = scmp.ne.s32.totalorder %s1167_s7, %s966_s23  ;;  %s75_s18 = int_to_ptr.vmem [resolvable:$true] %s74_s18 }
  0x46   :  { %p970_p5 = scmp.lt.u32.totalorder %s966_s23, %s1167_s7 }
  0x48   :  { %p972_p6 = pnand %p970_p5, %p967_p4 }
  0x4a   :  { %975 = shalt.err (!%p972_p6)
}
  0x4b   :  { %s976_s29 = scalar_lea.vmem %s75_s18, 1024  ;;  %p981_p8 = scmp.lt.s32.totalorder %s75_s18, %s75_s18 }
  0x4c   :  { %p977_p7 = scmp.ne.s32.totalorder %s75_s18, %s976_s29  ;;  %p982_p9 = scmp.lt.s32.totalorder %s976_s29, %s976_s29 }
  0x4e   :  { %p983_p10 = por %p982_p9, %p981_p8 }
  0x50   :  { %p984_p11 = pnand %p983_p10, %p977_p7 }
  0x52   :  { %987 = shalt.err (!%p984_p11)
}
  0x53   :  { %80 = dma.hbm_to_vmem [thread:$0]  %s1167_s7, 1024, %s75_s18, [#allocation9], %s995_s19, %s995_s19, %s996_s20  }
  0x54   :  { %988 = dma.done.wait [#allocation4], 128  }
  0x55   :  { %989 = vsyncadd [#allocation4], 4294967168 }
  0x56   :  { %990 = dma.done.wait [#allocation6], 3072  }
  0x57   :  { %991 = vsyncadd [#allocation6], 4294964224 }
  0x58   :  { %992 = dma.done.wait [#allocation9], 3072  }
  0x59   :  { %993 = vsyncadd [#allocation9], 4294964224  ;;  %v1003_v0 = vmov 0.0   ;;  %vm1004_vm0 = vmmov 0   ;;  %v1005_v1 = vmov 0   ;;  %v812_v2 = vld [vmem:[#allocation5] sm:$0xff]   ;;  %v236_v56 = vlaneseq }
  0x5a   :  { %760 = vmatprep.subr.bf16.mxu0 %v1003_v0  ;;  %776 = vmatprep.mubr.msk.bf16.mxu0 %vm1004_vm0, %v1003_v0  ;;  %99 = vst [vmem:[#allocation2] sm:$0xf] %v1005_v1  ;;  %v813_v3 = vld [vmem:[#allocation5 + $0x8] sm:$0xff]   ;;  %v814_v4 = vld [vmem:[#allocation5 + $0x10] sm:$0xff]   ;;  %v100_v5 = vld [vmem:[#allocation3] sm:$0xff]  ;;  %vm102_vm1 = vcmask 404480  }
  0x5b   :  { %358 = vmatprep.mubr.bf16.mxu1 %v1005_v1  ;;  %761 = vmatpush3.bf16.msra.mxu0 %v812_v2  ;;  %v101_v6 = vpack.c.bf16 %v100_v5, %v100_v5  ;;  %v820_v7 = vld [vmem:[#allocation7 + $0x4] ss:$8 sps:$4 sm:$0xff]   ;;  %v822_v8 = vld [vmem:[#allocation7] ss:$8 sps:$4 sm:$0xff]   ;;  %v815_v9 = vld [vmem:[#allocation5 + $0x18] sm:$0xff]   ;;  %v237_v57 = vshrl.u32 %v236_v56, 7 }
  0x5c   :  { %762 = vmatprep.subr.bf16.mxu0 %v1003_v0  ;;  %v823_v10 = vld [vmem:[#allocation7 + $0x14] ss:$8 sps:$4 sm:$0xff]   ;;  %326 = vmatprep.subr.bf16.mxu1 %v820_v7  ;;  %v825_v11 = vld [vmem:[#allocation7 + $0x10] ss:$8 sps:$4 sm:$0xff]   ;;  %v816_v12 = vld [vmem:[#allocation5 + $0x20] sm:$0xff]  }
  0x5d   :  { %103 = vst.msk [vmem:[#allocation2] sm:$0xf] %vm102_vm1, %v101_v6  ;;  %327 = vmatpush1.bf16.msra.mxu1 %v822_v8  ;;  %v826_v13 = vld [vmem:[#allocation7 + $0x24] ss:$8 sps:$4 sm:$0xff]   ;;  %v828_v14 = vld [vmem:[#allocation7 + $0x20] ss:$8 sps:$4 sm:$0xff]  }
  0x5e   :  { %328 = vmatprep.subr.bf16.mxu1 %v823_v10  ;;  %v829_v15 = vld [vmem:[#allocation7 + $0x34] ss:$8 sps:$4 sm:$0xff]   ;;  %v817_v16 = vld [vmem:[#allocation5 + $0x28] sm:$0xff]   ;;  %v831_v17 = vld [vmem:[#allocation7 + $0x30] ss:$8 sps:$4 sm:$0xff]   ;;  %v238_v58 = vsub.s32 0, %v237_v57 }
  0x5f   :  { %763 = vmatpush3.bf16.msra.mxu0 %v813_v3  ;;  %v818_v18 = vld [vmem:[#allocation5 + $0x30] sm:$0xff]   ;;  %v819_v19 = vld [vmem:[#allocation5 + $0x38] sm:$0xff]   ;;  %v832_v21 = vld [vmem:[#allocation7 + $0x44] ss:$8 sps:$4 sm:$0xff]   ;;  %v242_v60 = vsub.s32 1, %v237_v57 }
  0x60   :  { %764 = vmatprep.subr.bf16.mxu0 %v1003_v0  ;;  %v834_v22 = vld [vmem:[#allocation7 + $0x40] ss:$8 sps:$4 sm:$0xff]   ;;  %v835_v23 = vld [vmem:[#allocation7 + $0x54] ss:$8 sps:$4 sm:$0xff]   ;;  %v837_v24 = vld [vmem:[#allocation7 + $0x50] ss:$8 sps:$4 sm:$0xff]  }
  0x61   :  { %329 = vmatpush1.bf16.msra.mxu1 %v825_v11  ;;  %v838_v25 = vld [vmem:[#allocation7 + $0x64] ss:$8 sps:$4 sm:$0xff]   ;;  %v840_v26 = vld [vmem:[#allocation7 + $0x60] ss:$8 sps:$4 sm:$0xff]   ;;  %v841_v27 = vld [vmem:[#allocation7 + $0x74] ss:$8 sps:$4 sm:$0xff]  }
  0x62   :  { %330 = vmatprep.subr.bf16.mxu1 %v826_v13  ;;  %v843_v28 = vld [vmem:[#allocation7 + $0x70] ss:$8 sps:$4 sm:$0xff]   ;;  %v844_v29 = vld [vmem:[#allocation8 + $0x40] sm:$0xff]   ;;  %v846_v31 = vld [vmem:[#allocation8 + $0x48] sm:$0xff]  }
  0x63   :  { %765 = vmatpush3.bf16.msra.mxu0 %v814_v4  ;;  %v845_v30 = vld [vmem:[#allocation8] sm:$0xff]   ;;  %v847_v32 = vld [vmem:[#allocation8 + $0x8] sm:$0xff]   ;;  %v848_v33 = vld [vmem:[#allocation8 + $0x50] sm:$0xff]  }
  0x64   :  { %766 = vmatprep.subr.bf16.mxu0 %v1003_v0  ;;  %v104_v20 = vld [vmem:[#allocation2] sm:$0xf]  ;;  %v850_v35 = vld [vmem:[#allocation8 + $0x58] sm:$0xff]   ;;  %v669_v37 = vld [vmem:[%s1162_s2] ss:$0 sm:$0xff] }
  0x65   :  { %331 = vmatpush1.bf16.msra.mxu1 %v828_v14  ;;  %v849_v34 = vld [vmem:[#allocation8 + $0x10] sm:$0xff]   ;;  %v851_v36 = vld [vmem:[#allocation8 + $0x18] sm:$0xff]   ;;  %v852_v45 = vld [vmem:[#allocation8 + $0x60] sm:$0xff]  }
  0x66   :  { %332 = vmatprep.subr.bf16.mxu1 %v829_v15  ;;  %v853_v46 = vld [vmem:[#allocation8 + $0x20] sm:$0xff]   ;;  %v854_v47 = vld [vmem:[#allocation8 + $0x68] sm:$0xff]   ;;  %v856_v49 = vld [vmem:[#allocation8 + $0x70] sm:$0xff]  }
  0x67   :  { %767 = vmatpush3.bf16.msra.mxu0 %v815_v9  ;;  %v855_v48 = vld [vmem:[#allocation8 + $0x28] sm:$0xff]   ;;  %v857_v50 = vld [vmem:[#allocation8 + $0x30] sm:$0xff]   ;;  %v858_v51 = vld [vmem:[#allocation8 + $0x78] sm:$0xff]  }
  0x68   :  { %768 = vmatprep.subr.bf16.mxu0 %v1003_v0  ;;  %v859_v52 = vld [vmem:[#allocation8 + $0x38] sm:$0xff]   ;;  %v860_v53 = vld [vmem:[#allocation10] sm:$0xff]   ;;  %v861_v54 = vld [vmem:[#allocation10 + $0x8] sm:$0xff]  }
  0x69   :  { %333 = vmatpush1.bf16.msra.mxu1 %v831_v17  ;;  %v862_v55 = vld [vmem:[#allocation10 + $0x10] sm:$0xff]   ;;  %v234_v59 = vld [vmem:[%s1164_s4] sm:$0x3]  ;;  %v863_v10 = vld [vmem:[#allocation10 + $0x18] sm:$0xff]  }
  0x6a   :  { %334 = vmatprep.subr.bf16.mxu1 %v832_v21  ;;  %v239_v61 = vrot.slane %v234_v59, %v238_v58  ;;  %v243_v62 = vrot.slane %v234_v59, %v242_v60  ;;  %v864_v11 = vld [vmem:[#allocation10 + $0x20] sm:$0xff]   ;;  %v866_v13 = vld [vmem:[#allocation10 + $0x30] sm:$0xff]   ;;  %v867_v14 = vld [vmem:[#allocation10 + $0x38] sm:$0xff]  }
  0x6b   :  { %769 = vmatpush3.bf16.msra.mxu0 %v816_v12  ;;  %v865_v12 = vld [vmem:[#allocation10 + $0x28] sm:$0xff]  }
  0x6c   :  { %770 = vmatprep.subr.bf16.mxu0 %v1003_v0 }
  0x6d   :  { %335 = vmatpush1.bf16.msra.mxu1 %v834_v22 }
  0x6e   :  { %336 = vmatprep.subr.bf16.mxu1 %v835_v23 }
  0x6f   :  { %771 = vmatpush3.bf16.msra.mxu0 %v817_v16  ;;  %v694_v16 = vld [vmem:[%s1166_s6] ss:$0 sm:$0xff] }
  0x70   :  { %772 = vmatprep.subr.bf16.mxu0 %v1003_v0 }
  0x71   :  { %337 = vmatpush1.bf16.msra.mxu1 %v837_v24 }
  0x72   :  { %338 = vmatprep.subr.bf16.mxu1 %v838_v25 }
  0x73   :  { %773 = vmatpush3.bf16.msra.mxu0 %v818_v18 }
  0x74   :  { %774 = vmatprep.subr.bf16.mxu0 %v1003_v0 }
  0x75   :  { %339 = vmatpush1.bf16.msra.mxu1 %v840_v26 }
  0x76   :  { %340 = vmatprep.subr.bf16.mxu1 %v841_v27 }
  0x77   :  { %775 = vmatpush3.bf16.msra.mxu0 %v819_v19 }
  0x78   :  { %729 = vmatprep.subr.bf16.mxu0 %v844_v29 }
  0x79   :  { %341 = vmatpush1.bf16.msra.mxu1 %v843_v28 }
  0x7a   :  { %777 = vmatmul.mubr.bf16.vlgmr.msra.gmra.mrb[0].mxu0 %v104_v20  ;;  %780 = vmatprep.subr.bf16.mxu1 %v1003_v0 }
  0x7b   :  { %730 = vmatpush3.bf16.msra.mxu0 %v845_v30 }
  0x7c   :  { %731 = vmatprep.subr.bf16.mxu0 %v846_v31 }
  0x7f   :  { %732 = vmatpush3.bf16.msra.mxu0 %v847_v32 }
  0x80   :  { %733 = vmatprep.subr.bf16.mxu0 %v848_v33 }
  0x83   :  { %734 = vmatpush3.bf16.msra.mxu0 %v849_v34 }
  0x84   :  { %735 = vmatprep.subr.bf16.mxu0 %v850_v35 }
  0x87   :  { %736 = vmatpush3.bf16.msra.mxu0 %v851_v36 }
  0x88   :  { %737 = vmatprep.subr.bf16.mxu0 %v852_v45 }
  0x8b   :  { %738 = vmatpush3.bf16.msra.mxu0 %v853_v46 }
  0x8c   :  { %739 = vmatprep.subr.bf16.mxu0 %v854_v47 }
  0x8f   :  { %740 = vmatpush3.bf16.msra.mxu0 %v855_v48 }
  0x90   :  { %741 = vmatprep.subr.bf16.mxu0 %v856_v49 }
  0x93   :  { %742 = vmatpush3.bf16.msra.mxu0 %v857_v50 }
  0x94   :  { %743 = vmatprep.subr.bf16.mxu0 %v858_v51 }
  0x97   :  { %744 = vmatpush3.bf16.msra.mxu0 %v859_v52 }
 0x14d   :  { %v210_v38 = vpop.f32.mrb[0].mxu0 }
 0x14e   :  { %v211_v39 = vadd.f32 %v669_v37, %v210_v38  ;;  %v778_v40 = vpop.f32.mrb[1].mxu0 }
 0x14f   :  { %v213_v41 = vpop.f32.mrb[2].mxu0 }
 0x150   :  { %868 = vtanh.f32 %v211_v39  ;;  %v779_v42 = vpop.f32.mrb[3].mxu0 }
 0x15a   :  { %v869_v43 = vpop.eup %868 }
 0x15b   :  { %v217_v44 = vpack.c.bf16 %v869_v43, %v869_v43 }
 0x15d   :  { %359 = vmatmul.mubr.bf16.vlgmr.msra.gmra.mrb[0].mxu1 %v217_v44 }
 0x15e   :  { %796 = vmatprep.mubr.msk.bf16.mxu1 %vm1004_vm0, %v1003_v0  ;;  %781 = vmatpush3.bf16.msra.mxu1 %v860_v53 }
 0x15f   :  { %782 = vmatprep.subr.bf16.mxu1 %v1003_v0 }
 0x162   :  { %783 = vmatpush3.bf16.msra.mxu1 %v861_v54 }
 0x163   :  { %784 = vmatprep.subr.bf16.mxu1 %v1003_v0 }
 0x166   :  { %785 = vmatpush3.bf16.msra.mxu1 %v862_v55 }
 0x167   :  { %786 = vmatprep.subr.bf16.mxu1 %v1003_v0 }
 0x16a   :  { %787 = vmatpush3.bf16.msra.mxu1 %v863_v10 }
 0x16b   :  { %788 = vmatprep.subr.bf16.mxu1 %v1003_v0 }
 0x16e   :  { %789 = vmatpush3.bf16.msra.mxu1 %v864_v11 }
 0x16f   :  { %790 = vmatprep.subr.bf16.mxu1 %v1003_v0 }
 0x172   :  { %791 = vmatpush3.bf16.msra.mxu1 %v865_v12 }
 0x173   :  { %792 = vmatprep.subr.bf16.mxu1 %v1003_v0 }
 0x176   :  { %793 = vmatpush3.bf16.msra.mxu1 %v866_v13 }
 0x177   :  { %794 = vmatprep.subr.bf16.mxu1 %v1003_v0  ;;  %v711_v0 = vld [vmem:[%s1168_s8] ss:$0 sm:$0xff] }
 0x17a   :  { %795 = vmatpush3.bf16.msra.mxu1 %v867_v14 }
 0x230   :  { %v360_v63 = vpop.f32.mrb[0].mxu1 }
 0x231   :  { %v361_v1 = vadd.f32 %v360_v63, %v239_v61  ;;  %v362_v2 = vpop.f32.mrb[1].mxu1 }
 0x232   :  { %v363_v3 = vadd.f32 %v362_v2, %v243_v62  ;;  %v364_v4 = vpop.f32.mrb[2].mxu1 }
 0x233   :  { %870 = vtanh.f32 %v361_v1  ;;  %v365_v5 = vpop.f32.mrb[3].mxu1 }
 0x234   :  { %872 = vtanh.f32 %v363_v3 }
 0x23d   :  { %v871_v6 = vpop.eup %870 }
 0x23e   :  { %v873_v7 = vpop.eup %872  ;;  %v369_v9 = vpack.c.bf16 %v871_v6, %v871_v6 }
 0x23f   :  { %v370_v8 = vpack.c.bf16 %v873_v7, %v873_v7 }
 0x241   :  { %538 = vmatprep.mubr.bf16.mxu0 %v370_v8 }
 0x242   :  { %539 = vmatmul.mubr.bf16.vlgmr.msra.gmra.mrb[4].mxu0 %v369_v9 }
 0x315   :  { %v745_v15 = vpop.f32.mrb[4].mxu0 }
 0x316   :  { %v746_v17 = vpop.f32.mrb[5].mxu0 }
 0x317   :  { %v747_v18 = vadd.f32 %v746_v17, %v745_v15  ;;  %v748_v19 = vpop.f32.mrb[6].mxu0 }
 0x318   :  { %v749_v20 = vpop.f32.mrb[7].mxu0 }
 0x319   :  { %v541_v21 = vadd.f32 %v747_v18, %v694_v16 }
 0x31b   :  { %874 = vtanh.f32 %v541_v21 }
 0x325   :  { %v875_v22 = vpop.eup %874 }
 0x326   :  { %v547_v23 = vpack.c.bf16 %v875_v22, %v875_v22 }
 0x328   :  { %797 = vmatmul.mubr.bf16.vlgmr.msra.gmra.mrb[4].mxu1 %v547_v23 }
 0x3fb   :  { %v653_v24 = vpop.f32.mrb[4].mxu1 }
 0x3fc   :  { %v654_v25 = vadd.f32 %v711_v0, %v653_v24  ;;  %v798_v26 = vpop.f32.mrb[5].mxu1 }
 0x3fd   :  { %v656_v27 = vpop.f32.mrb[6].mxu1 }
 0x3fe   :  { %876 = vtanh.f32 %v654_v25  ;;  %v799_v28 = vpop.f32.mrb[7].mxu1 }
 0x408   :  { %v877_v29 = vpop.eup %876 }
 0x409   :  { %v660_v30 = vpack.c.bf16 %v877_v29, %v877_v29 }
 0x40b   :  { %661 = vst [vmem:[%s1169_s9] sm:$0xf] %v660_v30 }
 0x40c   :  { %666 = vsyncpa [#allocation4], 1 }
 0x40d   :  { %667 = vsyncpa [#allocation6], 1 }
 0x40e   :  { %668 = vsyncpa [#allocation9], 1 }

</bundles_post_ra>
